<compile_context>
chip_gen: v6e
topology: v6e:2x2x1
jax: 0.10.0
libtpu: 0.0.40
codegen_flags: <defaults>
</compile_context>

<pallas_src>
import jax
import jax.numpy as jnp
from jax.experimental import pallas as pl
from jax.experimental.pallas import tpu as pltpu

_ROW_GROUP = 128                 # rows of x folded into one lane-dense 640-wide row
_KERNEL_MIN_ROWS = 128 * 1024    # below this a single fused XLA dot wins


def fused_affine_kernel(x_ref, w_ref, b_ref, o_ref):
    # x_ref: (TBr, 640) streamed batch tile
    # w_ref: (640, 128) block-structured fused weights, resident in VMEM
    # b_ref: (1, 1)     fused scalar bias in SMEM
    # o_ref: (TBr, 128) lane-dense output tile (flattens to natural row order)
    y = jnp.dot(x_ref[...], w_ref[...], preferred_element_type=jnp.float32)
    o_ref[...] = (y + b_ref[0, 0]).astype(o_ref.dtype)


def _fuse_params(w1, b1, w2, b2):
    # Exact algebraic fusion of the two bias-only linear layers.
    w_col = (w1 @ w2).astype(jnp.float32)                        # (5, 1)
    b_fused = (b1 @ w2 + b2).reshape(1, 1).astype(jnp.float32)   # (1, 1)
    return w_col, b_fused


def neural_net_forward(x, w1, b1, w2, b2, *, block_row_groups=2048,
                       use_kernel=None):
    """Forward pass of NeuralNet.  x: (B, 5) f32 -> (B, 1) f32."""
    B, F = x.shape
    w_col, b_fused = _fuse_params(w1, b1, w2, b2)

    n_groups = B // _ROW_GROUP
    if use_kernel is None:
        use_kernel = B >= _KERNEL_MIN_ROWS
    if not use_kernel or n_groups == 0:
        # Small-batch fast path: one fused XLA dot, no kernel launch.
        return x @ w_col + b_fused

    # ---- Pallas path over the largest 128-row-aligned prefix --------------
    b_main = n_groups * _ROW_GROUP
    # Metadata-only when B % 128 == 0 (the common large-batch case); for a
    # ragged batch this is a contiguous-prefix slice + reshape.
    x_main = x[:b_main].reshape(n_groups, _ROW_GROUP * F)

    # Block-structured fused weights: w_blk[F*j + f, j] = w_fused[f].
    w_fused = w_col.reshape(F)
    w_blk = (jnp.eye(_ROW_GROUP, dtype=jnp.float32)[:, None, :]
             * w_fused[None, :, None]).reshape(_ROW_GROUP * F, _ROW_GROUP)

    tbr = min(block_row_groups, n_groups)
    if tbr < n_groups:
        tbr = max(8, (tbr // 8) * 8)          # sublane-align tiled blocks
    grid = (pl.cdiv(n_groups, tbr),)

    x_bytes = n_groups * _ROW_GROUP * F * 4
    out_bytes = n_groups * _ROW_GROUP * 4
    w_bytes = _ROW_GROUP * F * _ROW_GROUP * 4

    out2d = pl.pallas_call(
        fused_affine_kernel,
        out_shape=jax.ShapeDtypeStruct((n_groups, _ROW_GROUP), jnp.float32),
        grid=grid,
        in_specs=[
            pl.BlockSpec((tbr, _ROW_GROUP * F), lambda i: (i, 0)),        # x tile
            pl.BlockSpec((_ROW_GROUP * F, _ROW_GROUP), lambda i: (0, 0)),  # W, resident
            pl.BlockSpec(memory_space=pltpu.MemorySpace.SMEM),            # scalar bias
        ],
        out_specs=pl.BlockSpec((tbr, _ROW_GROUP), lambda i: (i, 0)),
        compiler_params=pltpu.CompilerParams(
            dimension_semantics=("parallel",),
            vmem_limit_bytes=32 * 1024 * 1024,
        ),
        cost_estimate=pl.CostEstimate(
            flops=2 * n_groups * (_ROW_GROUP * F) * _ROW_GROUP,
            transcendentals=0,
            bytes_accessed=x_bytes + w_bytes + out_bytes,
        ),
    )(x_main, w_blk, b_fused)

    out_main = out2d.reshape(b_main, 1)        # metadata-only reshape
    if b_main == B:
        return out_main
    # <=127 leftover rows: plain fused dot, no padding pass over x.
    out_tail = x[b_main:] @ w_col + b_fused
    return jnp.concatenate([out_main, out_tail], axis=0)


def init_params(key):
    # torch.nn.Linear default init: U(-1/sqrt(fan_in), 1/sqrt(fan_in)).
    # Stored as (in, out) so forward is x @ W + b  (== torch's x @ W.T + b).
    k1, k2, k3, k4 = jax.random.split(key, 4)
    bound1 = 1.0 / jnp.sqrt(5.0)
    bound2 = 1.0 / jnp.sqrt(10.0)
    w1 = jax.random.uniform(k1, (5, 10), jnp.float32, -bound1, bound1)
    b1 = jax.random.uniform(k2, (1, 10), jnp.float32, -bound1, bound1)
    w2 = jax.random.uniform(k3, (10, 1), jnp.float32, -bound2, bound2)
    b2 = jax.random.uniform(k4, (1, 1), jnp.float32, -bound2, bound2)
    return w1, b1, w2, b2


if __name__ == "__main__":
    key = jax.random.PRNGKey(0)
    k_params, k1, k2, k3 = jax.random.split(key, 4)
    w1, b1, w2, b2 = init_params(k_params)

    def reference(x):
        # Unfused two-layer affine map (same math as the torch module).
        return (x @ w1 + b1) @ w2 + b2

    # 1) Small batch -> fast path (plain fused XLA dot).
    x_small = jax.random.normal(k1, (8, 5), jnp.float32)
    out_small = jax.block_until_ready(
        neural_net_forward(x_small, w1, b1, w2, b2))
    assert out_small.shape == (8, 1)
    assert jnp.allclose(out_small, reference(x_small), atol=2e-5, rtol=1e-4)

    # 2) Pallas kernel, multi-step grid: 32 row-groups, 8 per tile, grid=(4,).
    x_med = jax.random.normal(k2, (4096, 5), jnp.float32)
    out_med = jax.block_until_ready(
        neural_net_forward(x_med, w1, b1, w2, b2,
                           block_row_groups=8, use_kernel=True))
    assert out_med.shape == (4096, 1)
    assert jnp.allclose(out_med, reference(x_med), atol=2e-5, rtol=1e-4)

    # 3) Pallas kernel on a ragged batch: 896 kernel rows + 104 tail rows.
    x_rag = jax.random.normal(k3, (1000, 5), jnp.float32)
    out_rag = jax.block_until_ready(
        neural_net_forward(x_rag, w1, b1, w2, b2, use_kernel=True))
    assert out_rag.shape == (1000, 1)
    assert jnp.allclose(out_rag, reference(x_rag), atol=2e-5, rtol=1e-4)

    print("KERNEL_OK")
</pallas_src>

<mosaic_0001>
module attributes {stable_mosaic.version = 11 : i64} {
  func.func @fused_affine_kernel(%arg0: i32, %arg1: memref<8x640xf32, #tpu.memory_space<vmem>>, %arg2: memref<640x128xf32, #tpu.memory_space<vmem>>, %arg3: memref<1x1xf32, #tpu.memory_space<smem>>, %arg4: memref<8x128xf32, #tpu.memory_space<vmem>>) attributes {dimension_semantics = [#tpu.dimension_semantics<parallel>], iteration_bounds = array<i64: 4>, scalar_prefetch = 0 : i64, scratch_operands = 0 : i64, tpu.core_type = #tpu.core_type<tc>, window_params = [{transform_indices = @transform_0, window_bounds = array<i64: 8, 640>}, {pipeline_mode = #tpu.pipeline_mode<synchronous>, transform_indices = @transform_1, window_bounds = array<i64: 640, 128>}, {transform_indices = @transform_2, window_bounds = array<i64: 1, 1>}, {transform_indices = @transform_3, window_bounds = array<i64: 8, 128>}]} {
    %c0 = arith.constant 0 : index
    %c0_0 = arith.constant 0 : index
    %0 = vector.load %arg1[%c0, %c0_0] : memref<8x640xf32, #tpu.memory_space<vmem>>, vector<8x640xf32>
    %c0_1 = arith.constant 0 : index
    %c0_2 = arith.constant 0 : index
    %1 = vector.load %arg2[%c0_1, %c0_2] : memref<640x128xf32, #tpu.memory_space<vmem>>, vector<640x128xf32>
    %cst = arith.constant dense<0.000000e+00> : vector<8x128xf32>
    %2 = tpu.matmul %0, %1, %cst {dimension_numbers = #tpu.dot_dimension_numbers<[1], [0], [0], [1], [0, 0, 1, 1], [], []>} : vector<8x640xf32>, vector<640x128xf32>, vector<8x128xf32> -> vector<8x128xf32>
    %c0_3 = arith.constant 0 : index
    %c0_4 = arith.constant 0 : index
    %3 = memref.load %arg3[%c0_3, %c0_4] : memref<1x1xf32, #tpu.memory_space<smem>>
    %4 = vector.broadcast %3 : f32 to vector<8x128xf32>
    %5 = arith.addf %2, %4 : vector<8x128xf32>
    %c0_5 = arith.constant 0 : index
    %c0_6 = arith.constant 0 : index
    %6 = vector.load %arg4[%c0_5, %c0_6] : memref<8x128xf32, #tpu.memory_space<vmem>>, vector<8x128xf32>
    tpu.vector_store %arg4[%c0_5, %c0_6], %5 {strides = array<i32>} : memref<8x128xf32, #tpu.memory_space<vmem>>, vector<8x128xf32>,
    return
  }
  func.func @transform_0(%arg0: i32) -> (i32, i32) {
    %c0_i32 = arith.constant 0 : i32
    %c0_i32_0 = arith.constant 0 : i32
    return %arg0, %c0_i32 : i32, i32
  }
  func.func @transform_1(%arg0: i32) -> (i32, i32) {
    %c0_i32 = arith.constant 0 : i32
    %c0_i32_0 = arith.constant 0 : i32
    %c0_i32_1 = arith.constant 0 : i32
    return %c0_i32, %c0_i32_0 : i32, i32
  }
  func.func @transform_2(%arg0: i32) -> (i32, i32) {
    %c0_i32 = arith.constant 0 : i32
    %c0_i32_0 = arith.constant 0 : i32
    %c0_i32_1 = arith.constant 0 : i32
    return %c0_i32, %c0_i32_0 : i32, i32
  }
  func.func @transform_3(%arg0: i32) -> (i32, i32) {
    %c0_i32 = arith.constant 0 : i32
    %c0_i32_0 = arith.constant 0 : i32
    return %arg0, %c0_i32 : i32, i32
  }
}

</mosaic_0001>

<bundles_post_ra>
// kernel: tpu_custom_call.1
= control target key start
LH: loop header
LB: loop body
LE: loop exit
PB: predicated region body
PF: predicated region fallthrough
CT: control target
= control target key end

     0   :  { %s1113_s0 = inlined_call_operand.hbm [shape: f32[32,640], index: 0, kind: input, shape index: {}]   ;;  %s1114_s1 = inlined_call_operand.hbm [shape: f32[640,128], index: 1, kind: input, shape index: {}]   ;;  %s1115_s2 = inlined_call_operand.<no memory space> [shape: f32[1,1], index: 2, kind: input, shape index: {}]   ;;  %s1116_s3 = inlined_call_operand.hbm [shape: f32[32,128], index: 3, kind: output, shape index: {}]  }
   0x1   :  { %8 = sst [smem:[#allocation2]] %s1115_s2 }
   0x2   :  { %9 = vsyncpa [#allocation4], 0 }
   0x3   :  { %11 = vsyncpa [#allocation4 + $0x1], 0 }
   0x4   :  { %12 = vsyncpa [#allocation7], 0 }
   0x5   :  { %13 = vsyncpa [#allocation5], 0 }
   0x6   :  { %15 = vsyncpa [#allocation5 + $0x1], 0  ;;  %s947_s14 = smov 0   ;;  %s949_s15 = smov 0  }
   0x7   :  { %s951_s16 = smov 0   ;;  %s953_s17 = smov 0  }
   0x8 LB: > { %s968_s2 = sadd.s32 4294967295, %s915_s17   ;;  %s595_s18 = sadd.s32 4294967294, %s915_s17   ;;  %s915_s17 = sphi %s953_s17, %s1137_s17   ;;  %s911_s16 = sphi %s951_s16, %s1136_s16   ;;  %s907_s15 = sphi %s949_s15, %s1135_s15   ;;  %s903_s14 = sphi %s947_s14, %s1134_s14  }
   0x9   : > { %p41_p0 = scmp.ne.s32.totalorder %s907_s15, %s903_s14  ;;  %p1117_p1 = scmp.eq.s32.totalorder %s968_s2, 0 }
   0xa   : > { %p113_p3 = scmp.eq.s32.totalorder %s595_s18, 3  ;;  %p596_p5 = scmp.ge.s32.totalorder %s915_s17, 1 }
   0xb   : > { %p977_p4 = por %p1117_p1, %p41_p0  ;;  %p120_p7 = scmp.lt.s32.totalorder %s915_s17, 5 }
   0xc   : > { %p982_p6 = por %p113_p3, %p41_p0  ;;  %s917_s22 = smov [#allocation6]  }
   0xd   : > { %s1121_s19 = scalar_select %p977_p4, 1, 0 }
   0xe   : > { %s1122_s20 = scalar_select %p982_p6, 1, 0 }
   0xf   : > { %p987_p8 = pnand %p596_p5, %p120_p7  ;;  %s132_s23 = sshll.u32 %s917_s22, 4  ;;  %s133_s23 = int_to_ptr.vmem [resolvable:$true] %s132_s23 }
  0x10   : > { %s1000_s25 = sadd.s32 1, %s915_s17   ;;  %s28_s26 = sadd.s32 1, %s911_s16 }
  0x11   : > { %s1123_s21 = scalar_select %p987_p8, 1, 0 }
  0x12   : > { %p740_p9 = pneg %p987_p8  ;;  %s25_s27 = ssub.s32 %s915_s17, %s1000_s25 }
  0x13   : > { %s804_s28 = scalar_lea.vmem %s133_s23, 10240  ;;  %p812_p3 = scmp.lt.s32.totalorder %s133_s23, %s133_s23 }
  0x14   : > { %p995_p10 = pnand %p740_p9, %p1117_p1  ;;  %p805_p12 = scmp.ne.s32.totalorder %s133_s23, %s804_s28 }
  0x15   : > { %p813_p5 = scmp.lt.s32.totalorder %s804_s28, %s804_s28 }
  0x16   : > { %p795_p11 = pneg %p995_p10 }
  0x17   : > { %p814_p7 = por %p813_p5, %p812_p3 }
  0x18   : > { %p807_p13 = pnand %p805_p12, %p795_p11 }
  0x1a   : > { %p808_p0 = pneg %p807_p13 }
  0x1c   : > { %p815_p2 = pnand %p814_p7, %p808_p0 }
  0x1e   : > { %818 = shalt.err (!%p815_p2)
}
  0x1f   : > { %s918_s29 = smov 128   ;;  %s919_s30 = smov 8  }
  0x20   : > { %743 = dma.hbm_to_vmem [thread:$0]  (!%p995_p10), %s1114_s1, 10240, %s133_s23, [#allocation7], %s918_s29, %s918_s29, %s919_s30  }
  0x21   : > { %p26_p9 = scmp.eq.s32.totalorder %s25_s27, 0  ;;  %p35_p11 = scmp.ne.s32.totalorder %s911_s16, %s907_s15 }
  0x22   : > { %p36_p12 = scmp.eq.s32.totalorder %s915_s17, 0  ;;  %p753_p2 = scmp.lt.s32.totalorder %s915_s17, 4 }
  0x23   : > { %s1017_s6 = scalar_select %p26_p9, %s911_s16, %s28_s26  }
  0x24   : > { %p37_p13 = por %p36_p12, %p35_p11  ;;  %p1125_p0 = scmp.eq.s32.totalorder %s968_s2, 3 }
  0x25   : > { %s149_s8 = sand.u32 1, %s911_s16   ;;  %s730_s9 = smul.u32 640, %s915_s17 }
  0x26   : > { %p1021_p3 = por %p1125_p0, %p35_p11  ;;  %s729_s10 = smul.u32 40, %s149_s8 }
  0x27   : > { %p1027_p5 = pnand %p753_p2, %p37_p13  ;;  %s1034_s18 = scalar_lea.hbm %s1113_s0, %s730_s9 }
  0x28   : > { %s1126_s7 = scalar_select %p1021_p3, 1, 0 }
  0x29   : > { %s153_s22 = scalar_lea.vmem [#allocation3], %s729_s10  ;;  %s150_s24 = scalar_lea.sflag [#allocation4], %s149_s8 }
  0x2a   : > { %s161_s23 = sshll.u32 %s153_s22, 4  ;;  %s819_s26 = scalar_lea.hbm %s1034_s18, 640  ;;  %s162_s23 = int_to_ptr.vmem [resolvable:$true] %s161_s23 }
  0x2b   : > { %p820_p10 = scmp.ne.s32.totalorder %s1034_s18, %s819_s26  ;;  %p821_p7 = pneg %p1027_p5 }
  0x2c   : > { %s824_s29 = scalar_lea.hbm %s1113_s0, 2560  ;;  %p825_p12 = scmp.lt.s32.totalorder %s1034_s18, %s1113_s0 }
  0x2d   : > { %p822_p9 = pnand %p821_p7, %p820_p10  ;;  %p826_p2 = scmp.lt.s32.totalorder %s824_s29, %s819_s26 }
  0x2f   : > { %p823_p11 = pneg %p822_p9  ;;  %p827_p13 = por %p826_p2, %p825_p12 }
  0x31   : > { %p828_p0 = pnand %p827_p13, %p823_p11 }
  0x33   : > { %831 = shalt.err (!%p828_p0)
}
  0x34   : > { %s832_s5 = scalar_lea.vmem %s162_s23, 640  ;;  %s920_s8 = smov [#allocation3]  }
  0x35   : > { %p833_p1 = scmp.ne.s32.totalorder %s162_s23, %s832_s5  ;;  %s837_s9 = sshll.u32 %s920_s8, 4  ;;  %s838_s9 = int_to_ptr.vmem [resolvable:$false] %s837_s9 }
  0x36   : > { %s839_s10 = scalar_lea.vmem %s838_s9, 1280  ;;  %p840_p10 = scmp.lt.s32.totalorder %s162_s23, %s838_s9 }
  0x37   : > { %p835_p6 = pnand %p833_p1, %p821_p7  ;;  %p841_p9 = scmp.lt.s32.totalorder %s839_s10, %s832_s5 }
  0x39   : > { %p836_p3 = pneg %p835_p6  ;;  %p842_p4 = por %p841_p9, %p840_p10 }
  0x3b   : > { %p843_p8 = pnand %p842_p4, %p836_p3 }
  0x3d   : > { %846 = shalt.err (!%p843_p8)
}
  0x3e   : > { %747 = dma.hbm_to_vmem [thread:$0]  (!%p1027_p5), %s1034_s18, 640, %s162_s23, %s150_s24  }
  0x3f   : > { %p1128_p11 = scmp.ne.s32.totalorder %s1123_s21, 0 }
  0x40   : > { %s1053_s12 = sand.u32 (!%p1128_p11), 1, %s907_s15   ;;  %p1129_p1 = scmp.ne.s32.totalorder (!%p1128_p11), %s1121_s19, 0 }
  0x41   : > { %170 = sbr.rel (%p1128_p11) target bundleno = 349 (0x15d), region = 32  ;;  %s173_s22 = scalar_lea.sflag (!%p1128_p11), [#allocation4], %s1053_s12 }
  0x42   : > { %s731_s13 = smul.u32 (!%p1128_p11), 40, %s1053_s12 }
  0x44   : > { %s1057_s26 = scalar_lea.vmem (!%p1128_p11), [#allocation3], %s731_s13 }
  0x46   : > { %890 = dma.done.wait (%p1129_p1), %s173_s22, 640  }
  0x47   : > { %892 = vsyncadd (%p1129_p1), %s173_s22, 4294966656  ;;  %p1130_p4 = scmp.eq.s32.totalorder %s968_s2, 0 }
  0x49   : > { %894 = dma.done.wait (%p1130_p4), [#allocation7], 10240   ;;  %p1131_p6 = pmov %p1130_p4 }
  0x4a   : > { %v239_v0 = vld [vmem:[#allocation6 + $0xf8] sm:$0xff]  ;;  %v238_v2 = vld [vmem:[#allocation6 + $0xf0] sm:$0xff]  ;;  %v237_v6 = vld [vmem:[#allocation6 + $0xe8] sm:$0xff]  ;;  %vm922_vm0 = vmmov 0   ;;  %s288_s19 = sld [smem:[#allocation2]]  ;;  %s602_s21 = sshll.u32 %s1053_s12, 3 }
  0x4b   : > { %896 = vsyncadd (%p1131_p6), [#allocation7], 4294957056  ;;  %v223_v1 = vld [vmem:[#allocation6 + $0x78] sm:$0xff]  ;;  %607 = vmatprep.subr.mxu0 %v239_v0  ;;  %v222_v4 = vld [vmem:[#allocation6 + $0x70] sm:$0xff]  ;;  %s604_s11 = sshll.u32 %s968_s2, 7  ;;  %s202_s18 = scalar_lea.vmem [#allocation8], %s602_s21 }
  0x4c   : > { %v271_v3 = vld [vmem:[#allocation6 + $0x1f8] sm:$0xff]  ;;  %608 = vmatpush3.msra.mxu0 %v223_v1  ;;  %v270_v7 = vld [vmem:[#allocation6 + $0x1f0] sm:$0xff]  ;;  %v221_v8 = vld [vmem:[#allocation6 + $0x68] sm:$0xff]  ;;  %s515_s23 = sshll.u32 %s202_s18, 4  ;;  %s1077_s28 = scalar_lea.hbm %s1116_s3, %s604_s11  ;;  %s516_s23 = int_to_ptr.vmem [resolvable:$true] %s515_s23 }
  0x4d   : > { %v255_v5 = vld [vmem:[#allocation6 + $0x178] sm:$0xff]  ;;  %642 = vmatprep.subr.mxu1 %v271_v3  ;;  %609 = vmatprep.subr.mxu0 %v238_v2  ;;  %v254_v9 = vld [vmem:[#allocation6 + $0x170] sm:$0xff]  ;;  %v269_v10 = vld [vmem:[#allocation6 + $0x1e8] sm:$0xff]  ;;  %s502_s29 = scalar_lea.sflag [#allocation5], %s1053_s12  ;;  %s847_s30 = scalar_lea.vmem %s516_s23, 128 }
  0x4e   : > { %643 = vmatpush3.msra.mxu1 %v255_v5  ;;  %610 = vmatpush3.msra.mxu0 %v222_v4  ;;  %v236_v11 = vld [vmem:[#allocation6 + $0xe0] sm:$0xff]  ;;  %v253_v12 = vld [vmem:[#allocation6 + $0x168] sm:$0xff]  ;;  %v235_v15 = vld [vmem:[#allocation6 + $0xd8] sm:$0xff]  ;;  %v921_v5 = vmov 0.0   ;;  %p848_p8 = scmp.ne.s32.totalorder %s516_s23, %s847_s30  ;;  %p1132_p3 = scmp.ne.s32.totalorder %s1126_s7, 0 }
  0x4f   : > { %644 = vmatprep.subr.mxu1 %v270_v7  ;;  %611 = vmatprep.subr.mxu0 %v237_v6  ;;  %v220_v13 = vld [vmem:[#allocation6 + $0x60] sm:$0xff]  ;;  %v219_v17 = vld [vmem:[#allocation6 + $0x58] sm:$0xff]  ;;  %v234_v19 = vld [vmem:[#allocation6 + $0xd0] sm:$0xff]  ;;  %s923_s2 = smov [#allocation8]  }
  0x50   : > { %645 = vmatpush3.msra.mxu1 %v254_v9  ;;  %v268_v14 = vld [vmem:[#allocation6 + $0x1e0] sm:$0xff]  ;;  %612 = vmatpush3.msra.mxu0 %v221_v8  ;;  %v267_v18 = vld [vmem:[#allocation6 + $0x1d8] sm:$0xff]  ;;  %v218_v21 = vld [vmem:[#allocation6 + $0x50] sm:$0xff]  ;;  %p849_p5 = pnand %p848_p8, %p1132_p3  ;;  %s851_s4 = sshll.u32 %s923_s2, 4  ;;  %s852_s4 = int_to_ptr.vmem [resolvable:$false] %s851_s4 }
  0x51   : > { %646 = vmatprep.subr.mxu1 %v269_v10  ;;  %v252_v16 = vld [vmem:[#allocation6 + $0x160] sm:$0xff]  ;;  %613 = vmatprep.subr.mxu0 %v236_v11  ;;  %v251_v20 = vld [vmem:[#allocation6 + $0x158] sm:$0xff]  ;;  %v266_v22 = vld [vmem:[#allocation6 + $0x1d0] sm:$0xff]  ;;  %s853_s5 = scalar_lea.vmem %s852_s4, 256  ;;  %p854_p12 = scmp.lt.s32.totalorder %s516_s23, %s852_s4 }
  0x52   : > { %647 = vmatpush3.msra.mxu1 %v253_v12  ;;  %614 = vmatpush3.msra.mxu0 %v220_v13  ;;  %v233_v23 = vld [vmem:[#allocation6 + $0xc8] sm:$0xff]  ;;  %v250_v24 = vld [vmem:[#allocation6 + $0x150] sm:$0xff]  ;;  %v232_v27 = vld [vmem:[#allocation6 + $0xc0] sm:$0xff]  ;;  %p850_p7 = pneg %p849_p5  ;;  %p855_p2 = scmp.lt.s32.totalorder %s853_s5, %s847_s30 }
  0x53   : > { %648 = vmatprep.subr.mxu1 %v268_v14  ;;  %615 = vmatprep.subr.mxu0 %v235_v15  ;;  %v217_v25 = vld [vmem:[#allocation6 + $0x48] sm:$0xff]  ;;  %v216_v29 = vld [vmem:[#allocation6 + $0x40] sm:$0xff]  ;;  %v231_v31 = vld [vmem:[#allocation6 + $0xb8] sm:$0xff] }
  0x54   : > { %649 = vmatpush3.msra.mxu1 %v252_v16  ;;  %616 = vmatpush3.msra.mxu0 %v219_v17  ;;  %v265_v26 = vld [vmem:[#allocation6 + $0x1c8] sm:$0xff]  ;;  %v264_v30 = vld [vmem:[#allocation6 + $0x1c0] sm:$0xff]  ;;  %v215_v33 = vld [vmem:[#allocation6 + $0x38] sm:$0xff]  ;;  %p856_p13 = por %p855_p2, %p854_p12 }
  0x55   : > { %650 = vmatprep.subr.mxu1 %v267_v18  ;;  %617 = vmatprep.subr.mxu0 %v234_v19  ;;  %v249_v28 = vld [vmem:[#allocation6 + $0x148] sm:$0xff]  ;;  %v248_v32 = vld [vmem:[#allocation6 + $0x140] sm:$0xff]  ;;  %v263_v34 = vld [vmem:[#allocation6 + $0x1b8] sm:$0xff] }
  0x56   : > { %651 = vmatpush3.msra.mxu1 %v251_v20  ;;  %618 = vmatpush3.msra.mxu0 %v218_v21  ;;  %v230_v35 = vld [vmem:[#allocation6 + $0xb0] sm:$0xff]  ;;  %v247_v36 = vld [vmem:[#allocation6 + $0x138] sm:$0xff]  ;;  %v229_v39 = vld [vmem:[#allocation6 + $0xa8] sm:$0xff]  ;;  %p857_p0 = pnand %p856_p13, %p850_p7 }
  0x57   : > { %652 = vmatprep.subr.mxu1 %v266_v22  ;;  %619 = vmatprep.subr.mxu0 %v233_v23  ;;  %v214_v37 = vld [vmem:[#allocation6 + $0x30] sm:$0xff]  ;;  %v213_v41 = vld [vmem:[#allocation6 + $0x28] sm:$0xff]  ;;  %v228_v43 = vld [vmem:[#allocation6 + $0xa0] sm:$0xff] }
  0x58   : > { %653 = vmatpush3.msra.mxu1 %v250_v24  ;;  %620 = vmatpush3.msra.mxu0 %v217_v25  ;;  %v262_v38 = vld [vmem:[#allocation6 + $0x1b0] sm:$0xff]  ;;  %v261_v42 = vld [vmem:[#allocation6 + $0x1a8] sm:$0xff]  ;;  %v212_v45 = vld [vmem:[#allocation6 + $0x20] sm:$0xff] }
  0x59   : > { %654 = vmatprep.subr.mxu1 %v265_v26  ;;  %621 = vmatprep.subr.mxu0 %v232_v27  ;;  %v246_v40 = vld [vmem:[#allocation6 + $0x130] sm:$0xff]  ;;  %v245_v44 = vld [vmem:[#allocation6 + $0x128] sm:$0xff]  ;;  %v260_v46 = vld [vmem:[#allocation6 + $0x1a0] sm:$0xff]  ;;  %v289_v26 = vstv %s288_s19 }
  0x5a   : > { %655 = vmatpush3.msra.mxu1 %v249_v28  ;;  %622 = vmatpush3.msra.mxu0 %v216_v29  ;;  %v227_v47 = vld [vmem:[#allocation6 + $0x98] sm:$0xff]  ;;  %v244_v48 = vld [vmem:[#allocation6 + $0x120] sm:$0xff]  ;;  %v226_v51 = vld [vmem:[#allocation6 + $0x90] sm:$0xff] }
  0x5b   : > { %656 = vmatprep.subr.mxu1 %v264_v30  ;;  %623 = vmatprep.subr.mxu0 %v231_v31  ;;  %v211_v49 = vld [vmem:[#allocation6 + $0x18] sm:$0xff]  ;;  %v210_v53 = vld [vmem:[#allocation6 + $0x10] sm:$0xff]  ;;  %v225_v55 = vld [vmem:[#allocation6 + $0x88] sm:$0xff] }
  0x5c   : > { %657 = vmatpush3.msra.mxu1 %v248_v32  ;;  %624 = vmatpush3.msra.mxu0 %v215_v33  ;;  %v259_v50 = vld [vmem:[#allocation6 + $0x198] sm:$0xff]  ;;  %v258_v54 = vld [vmem:[#allocation6 + $0x190] sm:$0xff]  ;;  %v209_v57 = vld [vmem:[#allocation6 + $0x8] sm:$0xff] }
  0x5d   : > { %658 = vmatprep.subr.mxu1 %v263_v34  ;;  %625 = vmatprep.subr.mxu0 %v230_v35  ;;  %v243_v52 = vld [vmem:[#allocation6 + $0x118] sm:$0xff]  ;;  %v242_v56 = vld [vmem:[#allocation6 + $0x110] sm:$0xff]  ;;  %v257_v58 = vld [vmem:[#allocation6 + $0x188] sm:$0xff] }
  0x5e   : > { %659 = vmatpush3.msra.mxu1 %v247_v36  ;;  %626 = vmatpush3.msra.mxu0 %v214_v37  ;;  %v224_v59 = vld [vmem:[#allocation6 + $0x80] sm:$0xff]  ;;  %v241_v62 = vld [vmem:[#allocation6 + $0x108] sm:$0xff]  ;;  %v203_v63 = vld [vmem:[%s1057_s26] sm:$0xff] }
  0x5f   : > { %660 = vmatprep.subr.mxu1 %v262_v38  ;;  %627 = vmatprep.subr.mxu0 %v229_v39  ;;  %v204_v60 = vld [vmem:[%s1057_s26 + $0x8] sm:$0xff]  ;;  %v206_v2 = vld [vmem:[%s1057_s26 + $0x18] sm:$0xff]  ;;  %v205_v4 = vld [vmem:[%s1057_s26 + $0x10] sm:$0xff] }
  0x60   : > { %661 = vmatpush3.msra.mxu1 %v246_v40  ;;  %628 = vmatpush3.msra.mxu0 %v213_v41  ;;  %v208_v61 = vld [vmem:[#allocation6] sm:$0xff]  ;;  %v287_v3 = vld [vmem:[#allocation6 + $0x278] sm:$0xff]  ;;  %v286_v6 = vld [vmem:[#allocation6 + $0x270] sm:$0xff] }
  0x61   : > { %662 = vmatprep.subr.mxu1 %v261_v42  ;;  %629 = vmatprep.subr.mxu0 %v228_v43  ;;  %v256_v0 = vld [vmem:[#allocation6 + $0x180] sm:$0xff]  ;;  %v285_v7 = vld [vmem:[#allocation6 + $0x268] sm:$0xff]  ;;  %v283_v9 = vld [vmem:[#allocation6 + $0x258] sm:$0xff] }
  0x62   : > { %663 = vmatpush3.msra.mxu1 %v245_v44  ;;  %630 = vmatpush3.msra.mxu0 %v212_v45  ;;  %v240_v1 = vld [vmem:[#allocation6 + $0x100] sm:$0xff]  ;;  %v282_v10 = vld [vmem:[#allocation6 + $0x250] sm:$0xff]  ;;  %v281_v11 = vld [vmem:[#allocation6 + $0x248] sm:$0xff] }
  0x63   : > { %664 = vmatprep.subr.mxu1 %v260_v46  ;;  %631 = vmatprep.subr.mxu0 %v227_v47  ;;  %v284_v8 = vld [vmem:[#allocation6 + $0x260] sm:$0xff]  ;;  %v279_v13 = vld [vmem:[#allocation6 + $0x238] sm:$0xff]  ;;  %v278_v14 = vld [vmem:[#allocation6 + $0x230] sm:$0xff] }
  0x64   : > { %665 = vmatpush3.msra.mxu1 %v244_v48  ;;  %632 = vmatpush3.msra.mxu0 %v211_v49  ;;  %v280_v12 = vld [vmem:[#allocation6 + $0x240] sm:$0xff]  ;;  %v277_v15 = vld [vmem:[#allocation6 + $0x228] sm:$0xff]  ;;  %v275_v17 = vld [vmem:[#allocation6 + $0x218] sm:$0xff] }
  0x65   : > { %666 = vmatprep.subr.mxu1 %v259_v50  ;;  %633 = vmatprep.subr.mxu0 %v226_v51  ;;  %v276_v16 = vld [vmem:[#allocation6 + $0x220] sm:$0xff]  ;;  %v274_v18 = vld [vmem:[#allocation6 + $0x210] sm:$0xff]  ;;  %v273_v19 = vld [vmem:[#allocation6 + $0x208] sm:$0xff] }
  0x66   : > { %667 = vmatpush3.msra.mxu1 %v243_v52  ;;  %634 = vmatpush3.msra.mxu0 %v210_v53  ;;  %v272_v20 = vld [vmem:[#allocation6 + $0x200] sm:$0xff]  ;;  %v207_v21 = vld [vmem:[%s1057_s26 + $0x20] sm:$0xff] }
  0x67   : > { %668 = vmatprep.subr.mxu1 %v258_v54  ;;  %635 = vmatprep.subr.mxu0 %v225_v55 }
  0x68   : > { %669 = vmatpush3.msra.mxu1 %v242_v56  ;;  %636 = vmatpush3.msra.mxu0 %v209_v57 }
  0x69   : > { %670 = vmatprep.subr.mxu1 %v257_v58  ;;  %637 = vmatprep.subr.mxu0 %v224_v59 }
  0x6a   : > { %354 = vmatprep.mubr.f32.mxu0 %v204_v60  ;;  %638 = vmatpush3.msra.mxu0 %v208_v61 }
  0x6b   : > { %671 = vmatpush3.msra.mxu1 %v241_v62  ;;  %355 = vmatmul.mubr.f32.vlgmr.msra.gmra.mxu0 %v203_v63 }
  0x6c   : > { %672 = vmatprep.subr.mxu1 %v256_v0  ;;  %694 = vmatprep.subr.mxu0 %v921_v5 }
  0x6d   : > { %673 = vmatpush3.msra.mxu1 %v240_v1  ;;  %424 = vmatprep.mubr.f32.mxu1 %v206_v2 }
  0x6e   : > { %695 = vmatpush3.msra.mxu0 %v287_v3  ;;  %425 = vmatmul.mubr.f32.vlgmr.msra.gmra.mxu1 %v205_v4 }
  0x6f   : > { %696 = vmatprep.subr.mxu0 %v921_v5  ;;  %726 = vmatprep.mubr.msk.f32.mxu0 %vm922_vm0, %v921_v5 }
  0x70   : > { %697 = vmatpush3.msra.mxu0 %v286_v6 }
  0x71   : > { %698 = vmatprep.subr.mxu0 %v921_v5 }
  0x72   : > { %699 = vmatpush3.msra.mxu0 %v285_v7 }
  0x73   : > { %700 = vmatprep.subr.mxu0 %v921_v5 }
  0x74   : > { %701 = vmatpush3.msra.mxu0 %v284_v8 }
  0x75   : > { %702 = vmatprep.subr.mxu0 %v921_v5 }
  0x76   : > { %703 = vmatpush3.msra.mxu0 %v283_v9 }
  0x77   : > { %704 = vmatprep.subr.mxu0 %v921_v5 }
  0x78   : > { %705 = vmatpush3.msra.mxu0 %v282_v10 }
  0x79   : > { %706 = vmatprep.subr.mxu0 %v921_v5 }
  0x7a   : > { %707 = vmatpush3.msra.mxu0 %v281_v11 }
  0x7b   : > { %708 = vmatprep.subr.mxu0 %v921_v5 }
  0x7c   : > { %709 = vmatpush3.msra.mxu0 %v280_v12 }
  0x7d   : > { %710 = vmatprep.subr.mxu0 %v921_v5 }
  0x7e   : > { %711 = vmatpush3.msra.mxu0 %v279_v13 }
  0x7f   : > { %712 = vmatprep.subr.mxu0 %v921_v5 }
  0x80   : > { %713 = vmatpush3.msra.mxu0 %v278_v14 }
  0x81   : > { %714 = vmatprep.subr.mxu0 %v921_v5 }
  0x82   : > { %715 = vmatpush3.msra.mxu0 %v277_v15 }
  0x83   : > { %716 = vmatprep.subr.mxu0 %v921_v5 }
  0x84   : > { %717 = vmatpush3.msra.mxu0 %v276_v16 }
  0x85   : > { %718 = vmatprep.subr.mxu0 %v921_v5 }
  0x86   : > { %719 = vmatpush3.msra.mxu0 %v275_v17 }
  0x87   : > { %720 = vmatprep.subr.mxu0 %v921_v5 }
  0x88   : > { %721 = vmatpush3.msra.mxu0 %v274_v18 }
  0x89   : > { %722 = vmatprep.subr.mxu0 %v921_v5 }
  0x8a   : > { %723 = vmatpush3.msra.mxu0 %v273_v19 }
  0x8b   : > { %724 = vmatprep.subr.mxu0 %v921_v5 }
  0x8c   : > { %725 = vmatpush3.msra.mxu0 %v272_v20 }
  0x8d   : > { %727 = vmatmul.mubr.f32.vlgmr.msra.gmra.mxu0 %v207_v21 }
 0x12b   : > { %v639_v22 = vpop.f32.mrf.mxu0 }
 0x12d   : > { %v640_v23 = vpop.f32.mrf.mxu0 }
 0x12e   : > { %v674_v24 = vpop.f32.mrf.mxu1  ;;  %v641_v25 = vadd.f32 %v640_v23, %v639_v22 }
 0x130   : > { %v675_v27 = vpop.f32.mrf.mxu1  ;;  %v357_v28 = vadd.f32 %v641_v25, %v289_v26 }
 0x131   : > { %v676_v29 = vadd.f32 %v675_v27, %v674_v24 }
 0x133   : > { %v427_v30 = vadd.f32 %v676_v29, %v357_v28 }
 0x14d   : > { %v496_v31 = vpop.f32.mrf.mxu0 }
 0x14e   : > { %v497_v32 = vadd.f32 %v496_v31, %v427_v30 }
 0x14f   : > { %v728_v33 = vpop.f32.mrf.mxu0 }
 0x150   : > { %500 = vst [vmem:[%s202_s18] sm:$0xff] %v497_v32 }
 0x151   : > { %860 = shalt.err (!%p857_p0)
}
 0x152   : > { %s861_s8 = scalar_lea.hbm %s1077_s28, 128  ;;  %s865_s12 = scalar_lea.hbm %s1116_s3, 512 }
 0x153   : > { %p862_p10 = scmp.ne.s32.totalorder %s1077_s28, %s861_s8  ;;  %p866_p1 = scmp.lt.s32.totalorder %s1077_s28, %s1116_s3 }
 0x154   : > { %p867_p4 = scmp.lt.s32.totalorder %s865_s12, %s861_s8 }
 0x155   : > { %p863_p9 = pnand %p862_p10, %p1132_p3 }
 0x156   : > { %p868_p6 = por %p867_p4, %p866_p1 }
 0x157   : > { %p864_p11 = pneg %p863_p9 }
 0x159   : > { %p869_p8 = pnand %p868_p6, %p864_p11 }
 0x15b   : > { %872 = shalt.err (!%p869_p8)
}
 0x15c   : > { %738 = dma.vmem_to_hbm [thread:$0]  (%p1132_p3), %s516_s23, 128, %s1077_s28, %s502_s29  }
 0x15d PF: > { %p755_p5 = scmp.ge.s32.totalorder %s915_s17, 2  ;;  %s527_s26 = sand.u32 1, %s903_s14  }
 0x15e   : > { %p1133_p7 = scmp.ne.s32.totalorder %s1122_s20, 0  ;;  %s528_s19 = scalar_lea.sflag [#allocation5], %s527_s26 }
 0x160   : > { %p749_p12 = pnand %p755_p5, %p1133_p7 }
 0x162   : > { %p750_p2 = pneg %p749_p12 }
 0x164   : > { %898 = dma.done.wait (%p750_p2), %s528_s19, 128  }
 0x165   : > { %900 = vsyncadd (%p750_p2), %s528_s19, 4294967168  ;;  %p18_p13 = scmp.ge.s32.totalorder %s1000_s25, 6   ;;  %s1134_s14 = smov %s907_s15 }
 0x166   : > { %s1135_s15 = smov %s911_s16  ;;  %s1136_s16 = smov %s1017_s6 }
 0x167   : > { %s1137_s17 = smov %s1000_s25  ;;  %20 = sbr.rel (!%p18_p13) target bundleno = 8 (0x8), region = 81 }
 0x16c   :  { %533 = vsyncpa [#allocation4], 1 }
 0x16d   :  { %535 = vsyncpa [#allocation4 + $0x1], 1 }
 0x16e   :  { %536 = vsyncpa [#allocation7], 1 }
 0x16f   :  { %537 = vsyncpa [#allocation5], 1 }
 0x170   :  { %539 = vsyncpa [#allocation5 + $0x1], 1 }

</bundles_post_ra>
